<compile_context>
chip_gen: v5e
topology: v5e:2x2
jax: 0.10.0
libtpu: 0.0.40
codegen_flags: <defaults>
</compile_context>

<pallas_src>
import jax
import jax.numpy as jnp
from jax.experimental import pallas as pl
from jax.experimental.pallas import tpu as pltpu

_LANES = 128
# Widest lane dims to try (wider last dim => fewer, larger, unmasked stores
# and larger DMA descriptors).  Checked largest-first.
_WIDE_LANE_CANDIDATES = (4096, 2048, 1024, 512, 256)
# Above this the whole-array HBM->HBM DMA path is used (no VMEM staging).
_SINGLE_BLOCK_MAX_BYTES = 2 * 1024 * 1024


# --------------------------------------------------------------------------
# Kernels
# --------------------------------------------------------------------------
def _identity_block_kernel(x_ref, o_ref):
    # Whole (lane-dense) tile resident in VMEM; pure pass-through.
    o_ref[...] = x_ref[...]


def _hbm_copy_kernel(x_ref, o_ref, sem):
    # Direct HBM->HBM DMA of the full array: no VMEM staging, no grid steps,
    # no TensorCore involvement -- the DMA engine does the whole copy.
    cp = pltpu.make_async_copy(x_ref, o_ref, sem)
    cp.start()
    cp.wait()


# --------------------------------------------------------------------------
# Wrappers
# --------------------------------------------------------------------------
def _lane_dense_2d(x):
    """Flatten to (rows, lanes) with the widest lane dim possible.

    Pads the flat array up to a multiple of 128 lanes when necessary so the
    last dim always fills whole vregs (unmasked vst).  Returns (x2d, pad).
    """
    flat = x.reshape(-1)
    total = flat.size
    pad = (-total) % _LANES
    if pad:
        flat = jnp.pad(flat, (0, pad))
    padded = total + pad
    lanes = _LANES
    for cand in _WIDE_LANE_CANDIDATES:
        if padded % cand == 0:
            lanes = cand
            break
    return flat.reshape(padded // lanes, lanes), pad


def _vmem_identity_path(x):
    """Small arrays: one full-extent lane-dense VMEM block, no grid."""
    x2d, pad = _lane_dense_2d(x)
    out2d = pl.pallas_call(
        _identity_block_kernel,
        out_shape=jax.ShapeDtypeStruct(x2d.shape, x2d.dtype),
        in_specs=[pl.BlockSpec(memory_space=pltpu.MemorySpace.VMEM)],
        out_specs=pl.BlockSpec(memory_space=pltpu.MemorySpace.VMEM),
    )(x2d)
    flat = out2d.reshape(-1)
    if pad:
        flat = flat[: x.size]
    return flat.reshape(x.shape)


def _hbm_copy_path(x):
    """Large arrays: single whole-array HBM->HBM DMA (no VMEM round trip)."""
    nbytes = x.size * x.dtype.itemsize
    return pl.pallas_call(
        _hbm_copy_kernel,
        out_shape=jax.ShapeDtypeStruct(x.shape, x.dtype),
        in_specs=[pl.BlockSpec(memory_space=pl.ANY)],
        out_specs=pl.BlockSpec(memory_space=pl.ANY),
        scratch_shapes=[pltpu.SemaphoreType.DMA(())],
        cost_estimate=pl.CostEstimate(
            flops=0, transcendentals=0, bytes_accessed=2 * nbytes),
    )(x)


@jax.jit
def transformer_forward(x: jax.Array) -> jax.Array:
    """Identity placeholder for Transformer.forward (NotImplemented upstream)."""
    nbytes = x.size * x.dtype.itemsize
    if nbytes <= _SINGLE_BLOCK_MAX_BYTES:
        return _vmem_identity_path(x)
    return _hbm_copy_path(x)


# --------------------------------------------------------------------------
# Demo / self-test
# --------------------------------------------------------------------------
if __name__ == "__main__":
    key = jax.random.PRNGKey(0)
    k1, k2 = jax.random.split(key)

    # Small, deterministic NCHW-like example input: [B=2, C=4, H=16, W=16].
    # Exercises the single-block VMEM path.
    x_small = jax.random.normal(k1, (2, 4, 16, 16), dtype=jnp.float32)
    y_small = jax.block_until_ready(transformer_forward(x_small))
    assert y_small.shape == x_small.shape and y_small.dtype == x_small.dtype
    assert bool(jnp.array_equal(y_small, x_small))

    # Larger input (8 MiB) to exercise the whole-array HBM->HBM DMA path.
    x_large = jax.random.normal(k2, (4, 512, 1024), dtype=jnp.float32)
    y_large = jax.block_until_ready(transformer_forward(x_large))
    assert y_large.shape == x_large.shape and y_large.dtype == x_large.dtype
    assert bool(jnp.array_equal(y_large, x_large))

    print("KERNEL_OK")
</pallas_src>

<mosaic_0001>
module attributes {stable_mosaic.version = 11 : i64} {
  func.func @_identity_block_kernel(%arg0: memref<1x2048xf32, #tpu.memory_space<vmem>>, %arg1: memref<1x2048xf32, #tpu.memory_space<vmem>>) attributes {dimension_semantics = [], scalar_prefetch = 0 : i64, scratch_operands = 0 : i64, tpu.core_type = #tpu.core_type<tc>} {
    %c0 = arith.constant 0 : index
    %c0_0 = arith.constant 0 : index
    %0 = vector.load %arg0[%c0, %c0_0] : memref<1x2048xf32, #tpu.memory_space<vmem>>, vector<1x2048xf32>
    %c0_1 = arith.constant 0 : index
    %c0_2 = arith.constant 0 : index
    %1 = vector.load %arg1[%c0_1, %c0_2] : memref<1x2048xf32, #tpu.memory_space<vmem>>, vector<1x2048xf32>
    tpu.vector_store %arg1[%c0_1, %c0_2], %0 {strides = array<i32>} : memref<1x2048xf32, #tpu.memory_space<vmem>>, vector<1x2048xf32>,
    return
  }
}

</mosaic_0001>

<bundles_post_ra>
// kernel: transformer_forward.1
= control target key start
LH: loop header
LB: loop body
LE: loop exit
PB: predicated region body
PF: predicated region fallthrough
CT: control target
= control target key end

     0   :  { %s38_s0 = inlined_call_operand.vmem [shape: f32[1,2048], index: 0, kind: input, shape index: {}]   ;;  %s39_s1 = inlined_call_operand.vmem [shape: f32[1,2048], index: 1, kind: output, shape index: {}]  }
   0x1   :  { %v8_v0 = vld [vmem:[%s38_s0] sm:$0xff]  ;;  %v9_v1 = vld [vmem:[%s38_s0 + $0x8] sm:$0xff] }
   0x2   :  { %10 = vst [vmem:[%s39_s1] sm:$0xff] %v8_v0 }
   0x3   :  { %11 = vst [vmem:[%s39_s1 + $0x8] sm:$0xff] %v9_v1 }

</bundles_post_ra>
